<compile_context>
chip_gen: v5e
topology: v5e:2x2
jax: 0.10.0
libtpu: 0.0.40
codegen_flags: <defaults>
</compile_context>

<pallas_src>
import jax
import jax.numpy as jnp
from jax import lax
from jax.experimental import pallas as pl


def _round_up(x, m):
    return ((x + m - 1) // m) * m


# ---------------------------------------------------------------------------
# One-time parameter prep: pad weights to a lane-dense output width, cast the
# MXU inputs to bf16, pre-sum the two biases (kept f32).
# ---------------------------------------------------------------------------
def prepare_params(w_i2h, b_i2h, w_h2h, b_h2h):
    """Returns (w_g, w_h, b):
       w_g: (input_size, hp)  bf16  -- i2h weights, out-dim zero-padded to hp
       w_h: (hp, hp)          bf16  -- h2h weights, both dims zero-padded
       b  : (1, hp)           f32   -- b_i2h + b_h2h, zero-padded
       with hp = round_up(hidden_size, 128) (lane-dense output width)."""
    input_size, hidden_size = w_i2h.shape
    hp = _round_up(hidden_size, 128)

    w_g = jnp.zeros((input_size, hp), jnp.float32)
    w_g = w_g.at[:, :hidden_size].set(w_i2h.astype(jnp.float32))

    w_h = jnp.zeros((hp, hp), jnp.float32)
    w_h = w_h.at[:hidden_size, :hidden_size].set(w_h2h.astype(jnp.float32))

    b = jnp.zeros((1, hp), jnp.float32)
    b = b.at[:, :hidden_size].set(
        (b_i2h.reshape(1, -1) + b_h2h.reshape(1, -1)).astype(jnp.float32))

    return w_g.astype(jnp.bfloat16), w_h.astype(jnp.bfloat16), b


# ---------------------------------------------------------------------------
# Single-step kernel (matches the PyTorch module's forward):
#   two small MXU dots (bf16 in, f32 acc) + bias add + ReLU.
# Inputs arrive at their true width; no wrapper-side activation padding.
# ---------------------------------------------------------------------------
def _core_cell_kernel(g_ref, h_ref, wg_ref, wh_ref, b_ref, out_ref):
    hs = h_ref.shape[1]                       # true hidden width (static)
    gb = g_ref[...].astype(jnp.bfloat16)
    hb = h_ref[...].astype(jnp.bfloat16)
    acc = jnp.dot(gb, wg_ref[...], preferred_element_type=jnp.float32)
    acc = acc + jnp.dot(hb, wh_ref[0:hs, :], preferred_element_type=jnp.float32)
    out_ref[...] = jnp.maximum(acc + b_ref[...], 0.0).astype(out_ref.dtype)


def core_network_forward(g_t, h_t_prev, w_g, w_h, b):
    """Single RNN-cell step. g_t: (B, input_size), h_t_prev: (B, hidden_size).
    Returns h_t: (B, hidden_size)."""
    B = g_t.shape[0]
    hidden_size = h_t_prev.shape[1]
    hp = w_h.shape[1]

    full = lambda shape: pl.BlockSpec(shape, lambda: (0,) * len(shape))
    out = pl.pallas_call(
        _core_cell_kernel,
        out_shape=jax.ShapeDtypeStruct((B, hp), jnp.float32),
        in_specs=[full(g_t.shape), full(h_t_prev.shape),
                  full(w_g.shape), full(w_h.shape), full(b.shape)],
        out_specs=full((B, hp)),
    )(g_t, h_t_prev, w_g, w_h, b)
    return out[:, :hidden_size]


# ---------------------------------------------------------------------------
# Grid-less sequence kernel: the whole g_seq is VMEM-resident; the timestep
# recurrence is an in-kernel unrolled fori_loop carrying h as a loop value.
# Weights/bias are loaded once; the bias broadcast is hoisted out of the loop.
# ---------------------------------------------------------------------------
def _core_seq_kernel(g_ref, h0_ref, wg_ref, wh_ref, b_ref, out_ref):
    T, B, _ = g_ref.shape
    hp = wh_ref.shape[1]
    wg = wg_ref[...]
    wh = wh_ref[...]
    bias = jnp.broadcast_to(b_ref[...], (B, hp))   # hoisted: one broadcast total

    def step(t, h):
        gb = g_ref[t].astype(jnp.bfloat16)
        acc = jnp.dot(gb, wg, preferred_element_type=jnp.float32)
        acc = acc + jnp.dot(h.astype(jnp.bfloat16), wh,
                            preferred_element_type=jnp.float32)
        h_new = jnp.maximum(acc + bias, 0.0)       # f32 elementwise tail
        out_ref[t] = h_new.astype(out_ref.dtype)
        return h_new

    lax.fori_loop(0, T, step, h0_ref[...], unroll=True)


def core_network_sequence(g_seq, h_0, w_g, w_h, b):
    """Runs the cell over a whole (small) sequence inside one grid-less kernel.
    g_seq: (T, B, input_size), h_0: (B, hidden_size).
    Returns h_seq: (T, B, hidden_size)."""
    T, B, _ = g_seq.shape
    hidden_size = h_0.shape[1]
    hp = w_h.shape[1]

    # One tiny (B, hp) pad of the initial hidden state; g_seq itself streams
    # at its true feature width (no padded HBM copy of the glimpse sequence).
    h0_pad = jnp.zeros((B, hp), jnp.float32).at[:, :hidden_size].set(
        h_0.astype(jnp.float32))

    full = lambda shape: pl.BlockSpec(shape, lambda: (0,) * len(shape))
    out = pl.pallas_call(
        _core_seq_kernel,
        out_shape=jax.ShapeDtypeStruct((T, B, hp), jnp.float32),
        in_specs=[full(g_seq.shape), full(h0_pad.shape),
                  full(w_g.shape), full(w_h.shape), full(b.shape)],
        out_specs=full((T, B, hp)),
    )(g_seq, h0_pad, w_g, w_h, b)
    return out[:, :, :hidden_size]


# ---------------------------------------------------------------------------
# References.
# ---------------------------------------------------------------------------
def _ref_step_f32(g, h, w_i2h, b_i2h, w_h2h, b_h2h):
    return jnp.maximum(g @ w_i2h + b_i2h + h @ w_h2h + b_h2h, 0.0)


def _ref_step_bf16_inputs(g, h, w_i2h, b_i2h, w_h2h, b_h2h):
    # Mirrors the kernel's MXU input rounding (bf16 inputs, f32 accumulate).
    z = (jnp.dot(g.astype(jnp.bfloat16), w_i2h.astype(jnp.bfloat16),
                 preferred_element_type=jnp.float32)
         + jnp.dot(h.astype(jnp.bfloat16), w_h2h.astype(jnp.bfloat16),
                   preferred_element_type=jnp.float32)
         + b_i2h.astype(jnp.float32) + b_h2h.astype(jnp.float32))
    return jnp.maximum(z, 0.0)


if __name__ == "__main__":
    key = jax.random.PRNGKey(0)
    B, input_size, hidden_size, T = 8, 64, 96, 8

    k1, k2, k3, k4, k5, k6, k7 = jax.random.split(key, 7)
    w_i2h = jax.random.normal(k1, (input_size, hidden_size), jnp.float32) * 0.1
    b_i2h = jax.random.normal(k2, (1, hidden_size), jnp.float32) * 0.1
    w_h2h = jax.random.normal(k3, (hidden_size, hidden_size), jnp.float32) * 0.1
    b_h2h = jax.random.normal(k4, (1, hidden_size), jnp.float32) * 0.1

    g_t = jax.random.normal(k5, (B, input_size), jnp.float32)
    h_t_prev = jax.random.normal(k6, (B, hidden_size), jnp.float32)
    g_seq = jax.random.normal(k7, (T, B, input_size), jnp.float32)

    # One-time parameter prep (padded lane-dense weights in bf16, summed bias).
    w_g, w_h, b = prepare_params(w_i2h, b_i2h, w_h2h, b_h2h)

    # --- single step (matches the PyTorch module's forward) ---
    h_t = jax.block_until_ready(core_network_forward(g_t, h_t_prev, w_g, w_h, b))
    assert h_t.shape == (B, hidden_size)
    ref_bf16 = _ref_step_bf16_inputs(g_t, h_t_prev, w_i2h, b_i2h, w_h2h, b_h2h)
    assert jnp.allclose(h_t, ref_bf16, atol=2e-3, rtol=2e-3)
    # Loose sanity check vs the pure-f32 module math (documents bf16 MXU inputs).
    ref_f32 = _ref_step_f32(g_t, h_t_prev, w_i2h, b_i2h, w_h2h, b_h2h)
    assert jnp.allclose(h_t, ref_f32, atol=5e-2, rtol=5e-2)

    # --- full sequence, recurrence inside one grid-less kernel ---
    h_seq = jax.block_until_ready(
        core_network_sequence(g_seq, h_t_prev, w_g, w_h, b))
    assert h_seq.shape == (T, B, hidden_size)
    h_ref = h_t_prev
    for t in range(T):
        h_ref = _ref_step_bf16_inputs(g_seq[t], h_ref, w_i2h, b_i2h, w_h2h, b_h2h)
        # tolerance absorbs tiny per-step accumulation-order / bf16-rounding drift
        assert jnp.allclose(h_seq[t], h_ref, atol=2e-2, rtol=2e-2)

    print("KERNEL_OK")
</pallas_src>

<mosaic_0001>
module attributes {stable_mosaic.version = 11 : i64} {
  func.func @_core_cell_kernel(%arg0: memref<8x64xf32, #tpu.memory_space<vmem>>, %arg1: memref<8x96xf32, #tpu.memory_space<vmem>>, %arg2: memref<64x128xbf16, #tpu.memory_space<vmem>>, %arg3: memref<128x128xbf16, #tpu.memory_space<vmem>>, %arg4: memref<1x128xf32, #tpu.memory_space<vmem>>, %arg5: memref<8x128xf32, #tpu.memory_space<vmem>>) attributes {dimension_semantics = [], scalar_prefetch = 0 : i64, scratch_operands = 0 : i64, tpu.core_type = #tpu.core_type<tc>} {
    %c0 = arith.constant 0 : index
    %c0_0 = arith.constant 0 : index
    %0 = vector.load %arg0[%c0, %c0_0] : memref<8x64xf32, #tpu.memory_space<vmem>>, vector<8x64xf32>
    %1 = arith.truncf %0 : vector<8x64xf32> to vector<8x64xbf16>
    %c0_1 = arith.constant 0 : index
    %c0_2 = arith.constant 0 : index
    %2 = vector.load %arg1[%c0_1, %c0_2] : memref<8x96xf32, #tpu.memory_space<vmem>>, vector<8x96xf32>
    %3 = arith.truncf %2 : vector<8x96xf32> to vector<8x96xbf16>
    %c0_3 = arith.constant 0 : index
    %c0_4 = arith.constant 0 : index
    %4 = vector.load %arg2[%c0_3, %c0_4] : memref<64x128xbf16, #tpu.memory_space<vmem>>, vector<64x128xbf16>
    %cst = arith.constant dense<0.000000e+00> : vector<8x128xf32>
    %5 = tpu.matmul %1, %4, %cst {dimension_numbers = #tpu.dot_dimension_numbers<[1], [0], [0], [1], [0, 0, 1, 1], [], []>} : vector<8x64xbf16>, vector<64x128xbf16>, vector<8x128xf32> -> vector<8x128xf32>
    %c0_5 = arith.constant 0 : index
    %c0_6 = arith.constant 0 : index
    %6 = vector.load %arg3[%c0_5, %c0_6] : memref<128x128xbf16, #tpu.memory_space<vmem>>, vector<96x128xbf16>
    %cst_7 = arith.constant dense<0.000000e+00> : vector<8x128xf32>
    %7 = tpu.matmul %3, %6, %cst_7 {dimension_numbers = #tpu.dot_dimension_numbers<[1], [0], [0], [1], [0, 0, 1, 1], [], []>} : vector<8x96xbf16>, vector<96x128xbf16>, vector<8x128xf32> -> vector<8x128xf32>
    %8 = arith.addf %5, %7 : vector<8x128xf32>
    %c0_8 = arith.constant 0 : index
    %c0_9 = arith.constant 0 : index
    %9 = vector.load %arg4[%c0_8, %c0_9] : memref<1x128xf32, #tpu.memory_space<vmem>>, vector<1x128xf32>
    %10 = vector.broadcast %9 : vector<1x128xf32> to vector<8x128xf32>
    %11 = arith.addf %8, %10 : vector<8x128xf32>
    %cst_10 = arith.constant 0.000000e+00 : f32
    %12 = vector.broadcast %cst_10 : f32 to vector<8x128xf32>
    %13 = arith.maximumf %11, %12 : vector<8x128xf32>
    %c0_11 = arith.constant 0 : index
    %c0_12 = arith.constant 0 : index
    %14 = vector.load %arg5[%c0_11, %c0_12] : memref<8x128xf32, #tpu.memory_space<vmem>>, vector<8x128xf32>
    tpu.vector_store %arg5[%c0_11, %c0_12], %13 {strides = array<i32>} : memref<8x128xf32, #tpu.memory_space<vmem>>, vector<8x128xf32>,
    return
  }
}

</mosaic_0001>

<bundles_post_ra>
// kernel: tpu_custom_call.1
= control target key start
LH: loop header
LB: loop body
LE: loop exit
PB: predicated region body
PF: predicated region fallthrough
CT: control target
= control target key end

     0   :  { %10 = vsyncpa [#allocation3], 0  ;;  %s468_s0 = inlined_call_operand.hbm [shape: f32[8,64], index: 0, kind: input, shape index: {}]   ;;  %s469_s1 = inlined_call_operand.hbm [shape: f32[8,96], index: 1, kind: input, shape index: {}]   ;;  %s470_s2 = inlined_call_operand.hbm [shape: bf16[64,128], index: 2, kind: input, shape index: {}]   ;;  %s471_s3 = inlined_call_operand.hbm [shape: bf16[128,128], index: 3, kind: input, shape index: {}]   ;;  %s472_s4 = inlined_call_operand.vmem [shape: f32[1,128], index: 4, kind: input, shape index: {}]   ;;  %s473_s5 = inlined_call_operand.hbm [shape: f32[8,128], index: 5, kind: output, shape index: {}]  }
   0x1   :  { %11 = vsyncpa [#allocation6], 0 }
   0x2   :  { %12 = vsyncpa [#allocation9], 0  ;;  %s30_s20 = sshll.u32 %s469_s1, 4  ;;  %s31_s20 = int_to_ptr.hbm [resolvable:$true] %s30_s20 }
   0x3   :  { %13 = vsyncpa [#allocation4], 0  ;;  %s413_s21 = smov [#allocation5]   ;;  %s19_s25 = sshll.u32 %s468_s0, 4  ;;  %s20_s25 = int_to_ptr.hbm [resolvable:$true] %s19_s25 }
   0x4   :  { %s32_s22 = sshll.u32 %s413_s21, 4  ;;  %s414_s26 = smov [#allocation2]   ;;  %s33_s22 = int_to_ptr.vmem [resolvable:$true] %s32_s22 }
   0x5   :  { %35 = dma.hbm_to_vmem [thread:$0]  %s31_s20, 128, %s33_s22, [#allocation6]  }
   0x6   :  { %s21_s27 = sshll.u32 %s414_s26, 4  ;;  %s40_s30 = sshll.u32 %s470_s2, 4  ;;  %s22_s27 = int_to_ptr.vmem [resolvable:$true] %s21_s27  ;;  %s41_s30 = int_to_ptr.hbm [resolvable:$true] %s40_s30 }
   0x7   :  { %24 = dma.hbm_to_vmem [thread:$0]  %s20_s25, 128, %s22_s27, [#allocation3]  }
   0x8   :  { %s415_s1 = smov [#allocation7]   ;;  %s53_s9 = sshll.u32 %s471_s3, 4  ;;  %s54_s9 = int_to_ptr.hbm [resolvable:$true] %s53_s9 }
   0x9   :  { %s42_s6 = sshll.u32 %s415_s1, 4  ;;  %s416_s10 = smov 64   ;;  %s43_s6 = int_to_ptr.vmem [resolvable:$true] %s42_s6 }
   0xa   :  { %s417_s0 = smov 4   ;;  %s418_s11 = smov [#allocation8]  }
   0xb   :  { %48 = dma.hbm_to_vmem [thread:$0]  %s41_s30, 512, %s43_s6, [#allocation6], %s416_s10, %s416_s10, %s417_s0  }
   0xc   :  { %s55_s12 = sshll.u32 %s418_s11, 4  ;;  %s56_s12 = int_to_ptr.vmem [resolvable:$true] %s55_s12 }
   0xd   :  { %61 = dma.hbm_to_vmem [thread:$0]  %s54_s9, 1024, %s56_s12, [#allocation9], %s416_s10, %s416_s10, %s417_s0  }
   0xe   :  { %405 = dma.done.wait [#allocation3], 128  }
   0xf   :  { %406 = vsyncadd [#allocation3], 4294967168 }
  0x10   :  { %407 = dma.done.wait [#allocation6], 640  }
  0x11   :  { %408 = vsyncadd [#allocation6], 4294966656 }
  0x12   :  { %409 = dma.done.wait [#allocation9], 1024  }
  0x13   :  { %410 = vsyncadd [#allocation9], 4294966272  ;;  %v276_v0 = vld [vmem:[#allocation8 + $0x28] sm:$0xff]  ;;  %v270_v1 = vld [vmem:[#allocation7 + $0x18] sm:$0xff]  ;;  %vm182_vm0 = vcmask 523264   ;;  %vm141_vm1 = vcmask 785408  }
  0x14   :  { %147 = vmatpush.bf16.msra.mxu0 %v276_v0  ;;  %190 = vmatpush.bf16.msra.mxu1 %v270_v1  ;;  %v275_v2 = vld [vmem:[#allocation8 + $0x20] sm:$0xff]  ;;  %v269_v3 = vld [vmem:[#allocation7 + $0x10] sm:$0xff]  ;;  %v274_v4 = vld [vmem:[#allocation8 + $0x18] sm:$0xff]  ;;  %s419_s13 = smov [#allocation10]   ;;  %s213_s17 = sshll.u32 %s473_s5, 4  ;;  %s214_s17 = int_to_ptr.hbm [resolvable:$true] %s213_s17 }
  0x15   :  { %v268_v5 = vld [vmem:[#allocation7 + $0x8] sm:$0xff]  ;;  %v273_v6 = vld [vmem:[#allocation8 + $0x10] sm:$0xff]  ;;  %v267_v7 = vld [vmem:[#allocation7] sm:$0xff]  ;;  %s211_s14 = sshll.u32 %s419_s13, 4  ;;  %s212_s14 = int_to_ptr.vmem [resolvable:$true] %s211_s14 }
  0x16   :  { %v81_v8 = vld [vmem:[#allocation2] sm:$0xff]  ;;  %v272_v10 = vld [vmem:[#allocation8 + $0x8] sm:$0xff]  ;;  %v271_v11 = vld [vmem:[#allocation8] sm:$0xff] }
  0x17   :  { %v82_v9 = vpack.c.bf16 %v81_v8, %v81_v8  ;;  %v83_v12 = vld [vmem:[#allocation5] sm:$0xff]  ;;  %v284_v15 = vld [vmem:[%s472_s4] ss:$0 sm:$0xff] }
  0x18   :  { %148 = vmatpush.bf16.msra.mxu0 %v275_v2  ;;  %191 = vmatpush.bf16.msra.mxu1 %v269_v3  ;;  %v84_v13 = vpack.c.bf16 %v83_v12, %v83_v12 }
  0x1c   :  { %149 = vmatpush.bf16.msra.mxu0 %v274_v4  ;;  %192 = vmatpush.bf16.msra.mxu1 %v268_v5 }
  0x20   :  { %150 = vmatpush.bf16.msra.mxu0 %v273_v6  ;;  %193 = vmatpush.bf16.msra.mxu1 %v267_v7 }
  0x23   :  { %266 = vmatmul.msk.bf16.vlgmr.msra.gmra.mxu1 %vm182_vm0, %v82_v9 }
  0x24   :  { %151 = vmatpush.bf16.msra.mxu0 %v272_v10 }
  0x28   :  { %152 = vmatpush.bf16.msra.mxu0 %v271_v11 }
  0x2b   :  { %249 = vmatmul.msk.bf16.vlgmr.msra.gmra.mxu0 %vm141_vm1, %v84_v13 }
  0xa0   :  { %v195_v14 = vpop.f32.mrf.mxu1 }
  0xa8   :  { %v154_v16 = vpop.f32.mrf.mxu0  ;;  %v197_v17 = vpop.f32.mrf.mxu1 }
  0xa9   :  { %v196_v18 = vadd.f32 %v195_v14, %v154_v16 }
  0xab   :  { %v203_v19 = vadd.f32 %v284_v15, %v196_v18 }
  0xad   :  { %v204_v20 = vmax.f32 %v203_v19, 0.0 }
  0xaf   :  { %205 = vst [vmem:[#allocation10] sm:$0xff] %v204_v20 }
  0xb0   :  { %v156_v21 = vpop.f32.mrf.mxu0  ;;  %216 = dma.vmem_to_hbm [thread:$0]  %s212_s14, 128, %s214_s17, [#allocation4]  }
  0xb1   :  { %411 = dma.done.wait [#allocation4], 128  }
  0xb2   :  { %412 = vsyncadd [#allocation4], 4294967168 }
  0xb3   :  { %221 = vsyncpa [#allocation3], 1 }
  0xb4   :  { %222 = vsyncpa [#allocation6], 1 }
  0xb5   :  { %223 = vsyncpa [#allocation9], 1 }
  0xb6   :  { %224 = vsyncpa [#allocation4], 1 }

</bundles_post_ra>
